<compile_context>
chip_gen: v7x
topology: tpu7x:2x2x1
jax: 0.10.0
libtpu: 0.0.40
codegen_flags: <defaults>
</compile_context>

<pallas_src>
import jax
import jax.numpy as jnp
from jax.experimental import pallas as pl
from jax.experimental.pallas import tpu as pltpu

# Problem sizes (small, consistent with the module: GATConv(num_dim,16,heads=8)
# -> GATConv(128, num_class, heads=1)).
N_NODES = 16
NUM_DIM = 32
NUM_CLASS = 4
HEADS1 = 8
OUT1 = 16
NEG_SLOPE = 0.2      # GATConv default LeakyReLU slope
NEG_INF = -1e30

HN = HEADS1 * N_NODES   # 128 — heads folded into the lane axis
HC = HEADS1 * OUT1      # 128 — concatenated layer-1 output width

# The fused aggregation reuses one 16x16 block structure for both the [H*N]
# row blocking and the [H*C] column blocking, so this must hold:
assert OUT1 == N_NODES


def _leaky_relu(v):
    return jnp.where(v > 0, v, NEG_SLOPE * v)


def gat_kernel(x_ref, adj_ref, w1_ref, b1_ref, w2_ref, b2_ref, out_ref):
    f32 = jnp.float32

    # ---------------- in-kernel constants (nothing DMA'd from HBM) -----------
    # dsel[r, c] = 1 iff (c mod 16) == r : [16, 128]
    #   * tiles any [16,16] matrix across the 8 head blocks (via one matmul)
    #   * selects the "source j == row i" diagonal inside each head block
    r16 = jax.lax.broadcasted_iota(jnp.int32, (N_NODES, HN), 0)
    c16 = jax.lax.broadcasted_iota(jnp.int32, (N_NODES, HN), 1)
    dsel = ((c16 & (N_NODES - 1)) == r16).astype(f32)
    # bd[r, c] = 1 iff r//16 == c//16 : [128, 128] per-head block diagonal
    r128 = jax.lax.broadcasted_iota(jnp.int32, (HN, HN), 0)
    c128 = jax.lax.broadcasted_iota(jnp.int32, (HN, HN), 1)
    bd = ((r128 >> 4) == (c128 >> 4)).astype(f32)
    ones_nn = jnp.ones((N_NODES, N_NODES), f32)
    eye_nn = (jax.lax.broadcasted_iota(jnp.int32, (N_NODES, N_NODES), 0) ==
              jax.lax.broadcasted_iota(jnp.int32, (N_NODES, N_NODES), 1)).astype(f32)
    lane = c16  # lane index within [16, 128]; reused by the butterfly reduce

    # ---------------- hoisted adjacency masks (edge j -> i) ------------------
    mask2 = jnp.where(adj_ref[...] > 0, 0.0, NEG_INF)                 # [N, N]
    mask1 = jnp.dot(mask2, dsel, preferred_element_type=f32)          # [N, H*N] tiled

    # ---------------- layer 1: GATConv(D, 16, heads=8, concat=True) ----------
    # One fused matmul yields h1, the dst attention scores pre-broadcast over
    # each head's 16 lanes, and the src scores — all 128-lane aligned slices.
    fused1 = jnp.dot(x_ref[...], w1_ref[...], preferred_element_type=f32)  # [N, 384]
    h1 = fused1[:, :HC]                        # [N, H*C]
    a_dst_b = fused1[:, HC:HC + HN]            # [N, H*N]; col h*16+j = <h1_i^h, att_dst^h>
    a_src_r = fused1[:, HC + HN:HC + 2 * HN]   # [N, H*N]; col h*16+j = <h1_i^h, att_src^h>
    # Transpose-free source broadcast: (ones @ (a_src_r * dsel))[i, h*16+j] = a_src_j^h.
    a_src_b = jnp.dot(ones_nn, a_src_r * dsel, preferred_element_type=f32)

    e1 = _leaky_relu(a_dst_b + a_src_b) + mask1                        # [N, H*N]

    # Per-head (16-lane segment) max via a 4-step XOR butterfly of lane rolls.
    m1 = e1
    for s in (1, 2, 4, 8):
        plus = pltpu.roll(m1, HN - s, 1)    # lane p receives lane p+s
        minus = pltpu.roll(m1, s, 1)        # lane p receives lane p-s
        m1 = jnp.maximum(m1, jnp.where((lane & s) == 0, plus, minus))
    p1 = jnp.exp(e1 - m1)                                              # [N, H*N]

    # Per-head softmax denominator, broadcast across each head's 16 lanes.
    den1 = jnp.dot(p1, bd, preferred_element_type=f32)                 # [N, H*N]
    # Single lane-dense K=128 aggregation: RHS is h1 replicated along sublanes
    # and masked block-diagonally, so p1 @ rhs directly gives the concatenated
    # per-head aggregates (valid because OUT1 == N_NODES == 16).
    rhs = jnp.concatenate([h1] * HEADS1, axis=0) * bd                  # [H*N, H*C]
    num1 = jnp.dot(p1, rhs, preferred_element_type=f32)                # [N, H*C]
    x2 = jnp.maximum(num1 * pl.reciprocal(den1, approx=True) + b1_ref[...], 0.0)
    # F.dropout(training=self.training): eval mode -> identity.
    # TODO(synk): training-mode dropout (pltpu.prng_* Bernoulli mask) not applied.

    # ---------------- layer 2: GATConv(128, num_class, heads=1) --------------
    fused2 = jnp.dot(x2, w2_ref[...], preferred_element_type=f32)      # [N, K+2]
    h2 = fused2[:, :NUM_CLASS]                                         # [N, K]
    a_src2 = fused2[:, NUM_CLASS:NUM_CLASS + 1]                        # [N, 1]
    a_dst2 = fused2[:, NUM_CLASS + 1:NUM_CLASS + 2]                    # [N, 1]
    # Transpose-free: (ones @ diag(a_src2))[i, j] = a_src2[j].
    a_src2_b = jnp.dot(ones_nn, a_src2 * eye_nn, preferred_element_type=f32)
    e2 = _leaky_relu(a_dst2 + a_src2_b) + mask2                        # [N, N]
    e2 = e2 - jnp.max(e2, axis=-1, keepdims=True)
    p2 = jnp.exp(e2)
    attn2 = p2 * pl.reciprocal(jnp.sum(p2, axis=-1, keepdims=True), approx=True)
    out2 = jnp.dot(attn2, h2, preferred_element_type=f32) + b2_ref[...]  # [N, K]

    # ---------------- log_softmax over class dim (dim=1), exact path ---------
    z = out2 - jnp.max(out2, axis=-1, keepdims=True)
    out_ref[...] = z - jnp.log(jnp.sum(jnp.exp(z), axis=-1, keepdims=True))


def _head_expand(att):
    """att [H, C] -> M [H*C, H*N] with M[h*C+c, h*N+j] = att[h, c] (block diag),
    so that (x @ w1) @ M yields the per-head attention score already broadcast
    across that head's 16 lanes."""
    eye_h = jnp.eye(HEADS1, dtype=jnp.float32)
    m = att[:, :, None, None] * eye_h[:, None, :, None]            # [H, C, H, 1]
    m = jnp.broadcast_to(m, (HEADS1, OUT1, HEADS1, N_NODES))       # [H, C, H, N]
    return m.reshape(HEADS1 * OUT1, HEADS1 * N_NODES)


def gat_forward(x, adj, params):
    # Fold the tiny attention-coefficient projections into the feature matmuls:
    # one MXU pass per layer produces features + attention scores.
    w1 = params["w1"]
    w1aug = jnp.concatenate(
        [w1,
         w1 @ _head_expand(params["att_dst1"]),
         w1 @ _head_expand(params["att_src1"])], axis=1)            # [32, 384]
    w2 = params["w2"]
    w2aug = jnp.concatenate([w2, w2 @ params["asrc2"], w2 @ params["adst2"]],
                            axis=1)                                 # [128, 6]

    args = (x, adj, w1aug, params["b1"], w2aug, params["b2"])

    # Grid-less call: whole working set (<60 KiB) lives in VMEM, no pipelining.
    # TODO(synk): for many graphs, batch them and add a leading grid axis with
    # dimension_semantics=("parallel",) so v7x's second TensorCore is used.
    vmem = pltpu.MemorySpace.VMEM
    return pl.pallas_call(
        gat_kernel,
        out_shape=jax.ShapeDtypeStruct((N_NODES, NUM_CLASS), jnp.float32),
        in_specs=[pl.BlockSpec(memory_space=vmem) for _ in args],
        out_specs=pl.BlockSpec(memory_space=vmem),
    )(*args)


def init_params(key):
    ks = jax.random.split(key, 6)
    # Layer 1: GATConv(NUM_DIM, OUT1, heads=HEADS1, concat=True)
    w1 = jax.random.normal(ks[0], (NUM_DIM, HEADS1 * OUT1), jnp.float32) * 0.2
    att_src1 = jax.random.normal(ks[1], (HEADS1, OUT1), jnp.float32) * 0.2
    att_dst1 = jax.random.normal(ks[2], (HEADS1, OUT1), jnp.float32) * 0.2
    b1 = jnp.zeros((1, HEADS1 * OUT1), jnp.float32)
    # Layer 2: GATConv(HEADS1*OUT1, NUM_CLASS, heads=1, concat=False)
    w2 = jax.random.normal(ks[3], (HEADS1 * OUT1, NUM_CLASS), jnp.float32) * 0.1
    asrc2 = jax.random.normal(ks[4], (NUM_CLASS, 1), jnp.float32) * 0.2
    adst2 = jax.random.normal(ks[5], (NUM_CLASS, 1), jnp.float32) * 0.2
    b2 = jnp.zeros((1, NUM_CLASS), jnp.float32)
    return dict(w1=w1, att_src1=att_src1, att_dst1=att_dst1, b1=b1,
                w2=w2, asrc2=asrc2, adst2=adst2, b2=b2)


if __name__ == "__main__":
    key = jax.random.PRNGKey(0)
    k_x, k_adj, k_p = jax.random.split(key, 3)

    # Node features [N, D]
    x = jax.random.normal(k_x, (N_NODES, NUM_DIM), jnp.float32)

    # Random undirected graph -> dense adjacency with self loops
    a = (jax.random.uniform(k_adj, (N_NODES, N_NODES)) < 0.3).astype(jnp.float32)
    adj = jnp.clip(a + a.T + jnp.eye(N_NODES, dtype=jnp.float32), 0.0, 1.0)

    params = init_params(k_p)

    out = gat_forward(x, adj, params)
    out = jax.block_until_ready(out)

    assert out.shape == (N_NODES, NUM_CLASS)
    assert bool(jnp.all(jnp.isfinite(out)))
    # log_softmax rows must sum (in prob space) to ~1
    assert bool(jnp.all(jnp.abs(jnp.sum(jnp.exp(out), axis=1) - 1.0) < 1e-4))
    print("KERNEL_OK")
</pallas_src>

<mosaic_0001>
module attributes {stable_mosaic.version = 11 : i64} {
  func.func @gat_kernel(%arg0: memref<16x32xf32, #tpu.memory_space<vmem>>, %arg1: memref<16x16xf32, #tpu.memory_space<vmem>>, %arg2: memref<32x384xf32, #tpu.memory_space<vmem>>, %arg3: memref<1x128xf32, #tpu.memory_space<vmem>>, %arg4: memref<128x6xf32, #tpu.memory_space<vmem>>, %arg5: memref<1x4xf32, #tpu.memory_space<vmem>>, %arg6: memref<16x4xf32, #tpu.memory_space<vmem>>) attributes {dimension_semantics = [], scalar_prefetch = 0 : i64, scratch_operands = 0 : i64, tpu.core_type = #tpu.core_type<tc>} {
    %0 = tpu.iota {dimensions = array<i32: 0>} : vector<16x128xi32>
    %1 = tpu.iota {dimensions = array<i32: 1>} : vector<16x128xi32>
    %c15_i32 = arith.constant 15 : i32
    %2 = vector.broadcast %c15_i32 : i32 to vector<16x128xi32>
    %3 = arith.andi %1, %2 : vector<16x128xi32>
    %4 = arith.cmpi eq, %3, %0 : vector<16x128xi32>
    %5 = arith.extui %4 : vector<16x128xi1> to vector<16x128xi32>
    %6 = arith.sitofp %5 : vector<16x128xi32> to vector<16x128xf32>
    %7 = tpu.iota {dimensions = array<i32: 0>} : vector<128x128xi32>
    %8 = tpu.iota {dimensions = array<i32: 1>} : vector<128x128xi32>
    %c4_i32 = arith.constant 4 : i32
    %9 = vector.broadcast %c4_i32 : i32 to vector<128x128xi32>
    %10 = arith.shrsi %7, %9 : vector<128x128xi32>
    %c4_i32_0 = arith.constant 4 : i32
    %11 = vector.broadcast %c4_i32_0 : i32 to vector<128x128xi32>
    %12 = arith.shrsi %8, %11 : vector<128x128xi32>
    %13 = arith.cmpi eq, %10, %12 : vector<128x128xi32>
    %14 = arith.extui %13 : vector<128x128xi1> to vector<128x128xi32>
    %15 = arith.sitofp %14 : vector<128x128xi32> to vector<128x128xf32>
    %cst = arith.constant 1.000000e+00 : f32
    %16 = vector.broadcast %cst : f32 to vector<16x16xf32>
    %17 = tpu.iota {dimensions = array<i32: 0>} : vector<16x16xi32>
    %18 = tpu.iota {dimensions = array<i32: 1>} : vector<16x16xi32>
    %19 = arith.cmpi eq, %17, %18 : vector<16x16xi32>
    %20 = arith.extui %19 : vector<16x16xi1> to vector<16x16xi32>
    %21 = arith.sitofp %20 : vector<16x16xi32> to vector<16x16xf32>
    %c0 = arith.constant 0 : index
    %c0_1 = arith.constant 0 : index
    %22 = vector.load %arg1[%c0, %c0_1] : memref<16x16xf32, #tpu.memory_space<vmem>>, vector<16x16xf32>
    %cst_2 = arith.constant 0.000000e+00 : f32
    %23 = vector.broadcast %cst_2 : f32 to vector<16x16xf32>
    %24 = arith.cmpf ogt, %22, %23 : vector<16x16xf32>
    %cst_3 = arith.constant 0.000000e+00 : f32
    %cst_4 = arith.constant -1.000000e+30 : f32
    %25 = vector.broadcast %cst_3 : f32 to vector<16x16xf32>
    %26 = vector.broadcast %cst_4 : f32 to vector<16x16xf32>
    %27 = arith.select %24, %25, %26 : vector<16x16xi1>, vector<16x16xf32>
    %cst_5 = arith.constant dense<0.000000e+00> : vector<16x128xf32>
    %28 = tpu.matmul %27, %6, %cst_5 {dimension_numbers = #tpu.dot_dimension_numbers<[1], [0], [0], [1], [0, 0, 1, 1], [], []>} : vector<16x16xf32>, vector<16x128xf32>, vector<16x128xf32> -> vector<16x128xf32>
    %c0_6 = arith.constant 0 : index
    %c0_7 = arith.constant 0 : index
    %29 = vector.load %arg0[%c0_6, %c0_7] : memref<16x32xf32, #tpu.memory_space<vmem>>, vector<16x32xf32>
    %c0_8 = arith.constant 0 : index
    %c0_9 = arith.constant 0 : index
    %30 = vector.load %arg2[%c0_8, %c0_9] : memref<32x384xf32, #tpu.memory_space<vmem>>, vector<32x384xf32>
    %cst_10 = arith.constant dense<0.000000e+00> : vector<16x384xf32>
    %31 = tpu.matmul %29, %30, %cst_10 {dimension_numbers = #tpu.dot_dimension_numbers<[1], [0], [0], [1], [0, 0, 1, 1], [], []>} : vector<16x32xf32>, vector<32x384xf32>, vector<16x384xf32> -> vector<16x384xf32>
    %32 = vector.extract_strided_slice %31 {offsets = [0, 0], sizes = [16, 128], strides = [1, 1]} : vector<16x384xf32> to vector<16x128xf32>
    %33 = vector.extract_strided_slice %31 {offsets = [0, 128], sizes = [16, 128], strides = [1, 1]} : vector<16x384xf32> to vector<16x128xf32>
    %34 = vector.extract_strided_slice %31 {offsets = [0, 256], sizes = [16, 128], strides = [1, 1]} : vector<16x384xf32> to vector<16x128xf32>
    %35 = arith.mulf %34, %6 : vector<16x128xf32>
    %cst_11 = arith.constant dense<0.000000e+00> : vector<16x128xf32>
    %36 = tpu.matmul %16, %35, %cst_11 {dimension_numbers = #tpu.dot_dimension_numbers<[1], [0], [0], [1], [0, 0, 1, 1], [], []>} : vector<16x16xf32>, vector<16x128xf32>, vector<16x128xf32> -> vector<16x128xf32>
    %37 = arith.addf %33, %36 : vector<16x128xf32>
    %cst_12 = arith.constant 0.000000e+00 : f32
    %38 = vector.broadcast %cst_12 : f32 to vector<16x128xf32>
    %39 = arith.cmpf ogt, %37, %38 : vector<16x128xf32>
    %cst_13 = arith.constant 2.000000e-01 : f32
    %40 = vector.broadcast %cst_13 : f32 to vector<16x128xf32>
    %41 = arith.mulf %40, %37 : vector<16x128xf32>
    %42 = arith.select %39, %37, %41 : vector<16x128xi1>, vector<16x128xf32>
    %43 = arith.addf %42, %28 : vector<16x128xf32>
    %c127_i32 = arith.constant 127 : i32
    %44 = tpu.dynamic_rotate %43 by %c127_i32 dim 1 : vector<16x128xf32>, i32 -> vector<16x128xf32>
    %c1_i32 = arith.constant 1 : i32
    %45 = tpu.dynamic_rotate %43 by %c1_i32 dim 1 : vector<16x128xf32>, i32 -> vector<16x128xf32>
    %c1_i32_14 = arith.constant 1 : i32
    %46 = vector.broadcast %c1_i32_14 : i32 to vector<16x128xi32>
    %47 = arith.andi %1, %46 : vector<16x128xi32>
    %c0_i32 = arith.constant 0 : i32
    %48 = vector.broadcast %c0_i32 : i32 to vector<16x128xi32>
    %49 = arith.cmpi eq, %47, %48 : vector<16x128xi32>
    %50 = arith.select %49, %44, %45 : vector<16x128xi1>, vector<16x128xf32>
    %51 = arith.maximumf %43, %50 : vector<16x128xf32>
    %c126_i32 = arith.constant 126 : i32
    %52 = tpu.dynamic_rotate %51 by %c126_i32 dim 1 : vector<16x128xf32>, i32 -> vector<16x128xf32>
    %c2_i32 = arith.constant 2 : i32
    %53 = tpu.dynamic_rotate %51 by %c2_i32 dim 1 : vector<16x128xf32>, i32 -> vector<16x128xf32>
    %c2_i32_15 = arith.constant 2 : i32
    %54 = vector.broadcast %c2_i32_15 : i32 to vector<16x128xi32>
    %55 = arith.andi %1, %54 : vector<16x128xi32>
    %c0_i32_16 = arith.constant 0 : i32
    %56 = vector.broadcast %c0_i32_16 : i32 to vector<16x128xi32>
    %57 = arith.cmpi eq, %55, %56 : vector<16x128xi32>
    %58 = arith.select %57, %52, %53 : vector<16x128xi1>, vector<16x128xf32>
    %59 = arith.maximumf %51, %58 : vector<16x128xf32>
    %c124_i32 = arith.constant 124 : i32
    %60 = tpu.dynamic_rotate %59 by %c124_i32 dim 1 : vector<16x128xf32>, i32 -> vector<16x128xf32>
    %c4_i32_17 = arith.constant 4 : i32
    %61 = tpu.dynamic_rotate %59 by %c4_i32_17 dim 1 : vector<16x128xf32>, i32 -> vector<16x128xf32>
    %c4_i32_18 = arith.constant 4 : i32
    %62 = vector.broadcast %c4_i32_18 : i32 to vector<16x128xi32>
    %63 = arith.andi %1, %62 : vector<16x128xi32>
    %c0_i32_19 = arith.constant 0 : i32
    %64 = vector.broadcast %c0_i32_19 : i32 to vector<16x128xi32>
    %65 = arith.cmpi eq, %63, %64 : vector<16x128xi32>
    %66 = arith.select %65, %60, %61 : vector<16x128xi1>, vector<16x128xf32>
    %67 = arith.maximumf %59, %66 : vector<16x128xf32>
    %c120_i32 = arith.constant 120 : i32
    %68 = tpu.dynamic_rotate %67 by %c120_i32 dim 1 : vector<16x128xf32>, i32 -> vector<16x128xf32>
    %c8_i32 = arith.constant 8 : i32
    %69 = tpu.dynamic_rotate %67 by %c8_i32 dim 1 : vector<16x128xf32>, i32 -> vector<16x128xf32>
    %c8_i32_20 = arith.constant 8 : i32
    %70 = vector.broadcast %c8_i32_20 : i32 to vector<16x128xi32>
    %71 = arith.andi %1, %70 : vector<16x128xi32>
    %c0_i32_21 = arith.constant 0 : i32
    %72 = vector.broadcast %c0_i32_21 : i32 to vector<16x128xi32>
    %73 = arith.cmpi eq, %71, %72 : vector<16x128xi32>
    %74 = arith.select %73, %68, %69 : vector<16x128xi1>, vector<16x128xf32>
    %75 = arith.maximumf %67, %74 : vector<16x128xf32>
    %76 = arith.subf %43, %75 : vector<16x128xf32>
    %77 = math.exp %76 : vector<16x128xf32>
    %cst_22 = arith.constant dense<0.000000e+00> : vector<16x128xf32>
    %78 = tpu.matmul %77, %15, %cst_22 {dimension_numbers = #tpu.dot_dimension_numbers<[1], [0], [0], [1], [0, 0, 1, 1], [], []>} : vector<16x128xf32>, vector<128x128xf32>, vector<16x128xf32> -> vector<16x128xf32>
    %79 = tpu.concatenate %32, %32, %32, %32, %32, %32, %32, %32 in 0 : vector<16x128xf32>, vector<16x128xf32>, vector<16x128xf32>, vector<16x128xf32>, vector<16x128xf32>, vector<16x128xf32>, vector<16x128xf32>, vector<16x128xf32> -> vector<128x128xf32>
    %80 = arith.mulf %79, %15 : vector<128x128xf32>
    %cst_23 = arith.constant dense<0.000000e+00> : vector<16x128xf32>
    %81 = tpu.matmul %77, %80, %cst_23 {dimension_numbers = #tpu.dot_dimension_numbers<[1], [0], [0], [1], [0, 0, 1, 1], [], []>} : vector<16x128xf32>, vector<128x128xf32>, vector<16x128xf32> -> vector<16x128xf32>
    %82 = tpu.reciprocal %78 {approx = true} : vector<16x128xf32> -> vector<16x128xf32>
    %83 = arith.mulf %81, %82 : vector<16x128xf32>
    %c0_24 = arith.constant 0 : index
    %c0_25 = arith.constant 0 : index
    %84 = vector.load %arg3[%c0_24, %c0_25] : memref<1x128xf32, #tpu.memory_space<vmem>>, vector<1x128xf32>
    %85 = vector.broadcast %84 : vector<1x128xf32> to vector<16x128xf32>
    %86 = arith.addf %83, %85 : vector<16x128xf32>
    %cst_26 = arith.constant 0.000000e+00 : f32
    %87 = vector.broadcast %cst_26 : f32 to vector<16x128xf32>
    %88 = arith.maximumf %86, %87 : vector<16x128xf32>
    %c0_27 = arith.constant 0 : index
    %c0_28 = arith.constant 0 : index
    %89 = vector.load %arg4[%c0_27, %c0_28] : memref<128x6xf32, #tpu.memory_space<vmem>>, vector<128x6xf32>
    %cst_29 = arith.constant dense<0.000000e+00> : vector<16x6xf32>
    %90 = tpu.matmul %88, %89, %cst_29 {dimension_numbers = #tpu.dot_dimension_numbers<[1], [0], [0], [1], [0, 0, 1, 1], [], []>} : vector<16x128xf32>, vector<128x6xf32>, vector<16x6xf32> -> vector<16x6xf32>
    %91 = vector.extract_strided_slice %90 {offsets = [0, 0], sizes = [16, 4], strides = [1, 1]} : vector<16x6xf32> to vector<16x4xf32>
    %92 = vector.extract_strided_slice %90 {offsets = [0, 4], sizes = [16, 1], strides = [1, 1]} : vector<16x6xf32> to vector<16x1xf32>
    %93 = vector.extract_strided_slice %90 {offsets = [0, 5], sizes = [16, 1], strides = [1, 1]} : vector<16x6xf32> to vector<16x1xf32>
    %94 = vector.broadcast %92 : vector<16x1xf32> to vector<16x16xf32>
    %95 = arith.mulf %94, %21 : vector<16x16xf32>
    %cst_30 = arith.constant dense<0.000000e+00> : vector<16x16xf32>
    %96 = tpu.matmul %16, %95, %cst_30 {dimension_numbers = #tpu.dot_dimension_numbers<[1], [0], [0], [1], [0, 0, 1, 1], [], []>} : vector<16x16xf32>, vector<16x16xf32>, vector<16x16xf32> -> vector<16x16xf32>
    %97 = vector.broadcast %93 : vector<16x1xf32> to vector<16x16xf32>
    %98 = arith.addf %97, %96 : vector<16x16xf32>
    %cst_31 = arith.constant 0.000000e+00 : f32
    %99 = vector.broadcast %cst_31 : f32 to vector<16x16xf32>
    %100 = arith.cmpf ogt, %98, %99 : vector<16x16xf32>
    %cst_32 = arith.constant 2.000000e-01 : f32
    %101 = vector.broadcast %cst_32 : f32 to vector<16x16xf32>
    %102 = arith.mulf %101, %98 : vector<16x16xf32>
    %103 = arith.select %100, %98, %102 : vector<16x16xi1>, vector<16x16xf32>
    %104 = arith.addf %103, %27 : vector<16x16xf32>
    %cst_33 = arith.constant dense<0xFF800000> : vector<16xf32>
    %105 = vector.multi_reduction <maximumf>, %104, %cst_33 [1] : vector<16x16xf32> to vector<16xf32>
    %106 = vector.shape_cast %105 : vector<16xf32> to vector<16x1xf32>
    %107 = vector.broadcast %106 : vector<16x1xf32> to vector<16x16xf32>
    %108 = arith.subf %104, %107 : vector<16x16xf32>
    %109 = math.exp %108 : vector<16x16xf32>
    %cst_34 = arith.constant dense<0.000000e+00> : vector<16xf32>
    %110 = vector.multi_reduction <add>, %109, %cst_34 [1] : vector<16x16xf32> to vector<16xf32>
    %111 = vector.shape_cast %110 : vector<16xf32> to vector<16x1xf32>
    %112 = tpu.reciprocal %111 {approx = true} : vector<16x1xf32> -> vector<16x1xf32>
    %113 = vector.broadcast %112 : vector<16x1xf32> to vector<16x16xf32>
    %114 = arith.mulf %109, %113 : vector<16x16xf32>
    %cst_35 = arith.constant dense<0.000000e+00> : vector<16x4xf32>
    %115 = tpu.matmul %114, %91, %cst_35 {dimension_numbers = #tpu.dot_dimension_numbers<[1], [0], [0], [1], [0, 0, 1, 1], [], []>} : vector<16x16xf32>, vector<16x4xf32>, vector<16x4xf32> -> vector<16x4xf32>
    %c0_36 = arith.constant 0 : index
    %c0_37 = arith.constant 0 : index
    %116 = vector.load %arg5[%c0_36, %c0_37] : memref<1x4xf32, #tpu.memory_space<vmem>>, vector<1x4xf32>
    %117 = vector.broadcast %116 : vector<1x4xf32> to vector<16x4xf32>
    %118 = arith.addf %115, %117 : vector<16x4xf32>
    %cst_38 = arith.constant dense<0xFF800000> : vector<16xf32>
    %119 = vector.multi_reduction <maximumf>, %118, %cst_38 [1] : vector<16x4xf32> to vector<16xf32>
    %120 = vector.shape_cast %119 : vector<16xf32> to vector<16x1xf32>
    %121 = vector.broadcast %120 : vector<16x1xf32> to vector<16x4xf32>
    %122 = arith.subf %118, %121 : vector<16x4xf32>
    %123 = math.exp %122 : vector<16x4xf32>
    %cst_39 = arith.constant dense<0.000000e+00> : vector<16xf32>
    %124 = vector.multi_reduction <add>, %123, %cst_39 [1] : vector<16x4xf32> to vector<16xf32>
    %125 = vector.shape_cast %124 : vector<16xf32> to vector<16x1xf32>
    %126 = math.log %125 : vector<16x1xf32>
    %127 = vector.broadcast %126 : vector<16x1xf32> to vector<16x4xf32>
    %128 = arith.subf %122, %127 : vector<16x4xf32>
    %c0_40 = arith.constant 0 : index
    %c0_41 = arith.constant 0 : index
    %129 = vector.load %arg6[%c0_40, %c0_41] : memref<16x4xf32, #tpu.memory_space<vmem>>, vector<16x4xf32>
    tpu.vector_store %arg6[%c0_40, %c0_41], %128 {strides = array<i32>} : memref<16x4xf32, #tpu.memory_space<vmem>>, vector<16x4xf32>,
    return
  }
}

</mosaic_0001>

<bundles_post_ra>
// kernel: tpu_custom_call.1
= control target key start
LH: loop header
LB: loop body
LE: loop exit
PB: predicated region body
PF: predicated region fallthrough
CT: control target
= control target key end

     0   :  { %v23_v0 = vlaneseq  ;;  %vm1940_vm0 = vcmask 130048   ;;  %v1493_v5 = vmov -1e+30   ;;  %v1943_v18 = vmov 1.0|1.0   ;;  %s1499_s28 = smov 2   ;;  %s1933_s1 = inlined_call_operand.vmem [shape: f32[16,16], index: 1, kind: input, shape index: {}]   ;;  %s1934_s2 = inlined_call_operand.vmem [shape: f32[32,384], index: 2, kind: input, shape index: {}]   ;;  %s1935_s0 = inlined_call_operand.vmem [shape: f32[16,32], index: 0, kind: input, shape index: {}]   ;;  %s1936_s4 = inlined_call_operand.vmem [shape: f32[128,6], index: 4, kind: input, shape index: {}]   ;;  %s1937_s3 = inlined_call_operand.vmem [shape: f32[1,128], index: 3, kind: input, shape index: {}]   ;;  %s1938_s5 = inlined_call_operand.vmem [shape: f32[1,4], index: 5, kind: input, shape index: {}]   ;;  %s1939_s6 = inlined_call_operand.vmem [shape: f32[16,4], index: 6, kind: output, shape index: {}]  }
   0x1   :  { %v120_v1 = vld [vmem:[%s1933_s1] sm:$0xff]  ;;  %v121_v4 = vld [vmem:[%s1933_s1 + $0x8] sm:$0xff]  ;;  %v213_v15 = vld [vmem:[%s1934_s2 + $0x18] sm:$0xff]  ;;  %v1945_v27 = vmov 0.0   ;;  %vm222_vm6 = vcmask 261120   ;;  %v1947_v34 = vmov 1.0  }
   0x2   :  { %v1545_v2 = vshrl.u32 %v23_v0, 7  ;;  %v1547_v3 = vand.u32 127, %v23_v0  ;;  %vm122_vm1 = vcmp.gt.f32.partialorder %v120_v1, 0.0  ;;  %v211_v7 = vld [vmem:[%s1934_s2 + $0x8] sm:$0xff]  ;;  %v214_v8 = vld [vmem:[%s1934_s2 + $0x20] sm:$0xff]  ;;  %vm123_vm4 = vcmp.gt.f32.partialorder %v121_v4, 0.0 }
   0x3   :  { %v1552_v6 = vsel %vm122_vm1, 0.0, %v1493_v5  ;;  %v1327_v13 = vpack.c.bf16 %v214_v8, %v211_v7  ;;  %v210_v14 = vld [vmem:[%s1934_s2] sm:$0xff]  ;;  %v217_v16 = vld [vmem:[%s1934_s2 + $0x38] sm:$0xff]  ;;  %v220_v17 = vld [vmem:[%s1934_s2 + $0x50] sm:$0xff]  ;;  %v1594_v19 = vsel %vm123_vm4, 0.0, %v1493_v5  ;;  %v1959_v0 = vmov 0 }
   0x4   :  { %v1561_v9 = vadd.s32 8, %v1545_v2  ;;  %v28_v10 = vand.u32 15, %v1547_v3  ;;  %1183 = vmatprep.mubr.msk.f32.mxu0 %vm1940_vm0, %v1552_v6  ;;  %v1329_v20 = vpack.c.bf16 %v213_v15, %v210_v14  ;;  %v1331_v21 = vpack.c.bf16 %v220_v17, %v217_v16  ;;  %v216_v22 = vld [vmem:[%s1934_s2 + $0x30] sm:$0xff]  ;;  %v219_v23 = vld [vmem:[%s1934_s2 + $0x48] sm:$0xff]  ;;  %v218_v29 = vld [vmem:[%s1934_s2 + $0x40] sm:$0xff]  ;;  %s1500_s1 = smov 126  }
   0x5   :  { %v212_v24 = vld [vmem:[%s1934_s2 + $0x10] sm:$0xff]  ;;  %v215_v25 = vld [vmem:[%s1934_s2 + $0x28] sm:$0xff]  ;;  %v1333_v26 = vpack.c.bf16 %v219_v23, %v216_v22  ;;  %v221_v30 = vld [vmem:[%s1934_s2 + $0x58] sm:$0xff]  ;;  %v35_v35 = vadd.s32 16, %v1545_v2  ;;  %v37_v36 = vadd.s32 32, %v1545_v2  ;;  %v39_v37 = vadd.s32 48, %v1545_v2 }
   0x6   :  { %vm1567_vm2 = vcmp.eq.s32.totalorder %v28_v10, %v1545_v2  ;;  %vm1572_vm3 = vcmp.eq.s32.totalorder %v28_v10, %v1561_v9  ;;  %v1335_v28 = vpack.c.bf16 %v215_v25, %v212_v24  ;;  %v208_v31 = vld [vmem:[%s1935_s0] sm:$0xff]  ;;  %v1339_v32 = vpack.c.bf16 %v221_v30, %v218_v29  ;;  %v209_v33 = vld [vmem:[%s1935_s0 + $0x8] sm:$0xff]  ;;  %s1497_s0 = smov 127   ;;  %s1498_s2 = smov 1  }
   0x7   :  { %vm1323_vm5 = vmpackc.low %vm1572_vm3, %vm1567_vm2  ;;  %v65_v38 = vshra.s32 %v1547_v3, 4  ;;  %v41_v39 = vadd.s32 64, %v1545_v2  ;;  %v49_v40 = vshra.s32 %v1545_v2, 4  ;;  %v36_v41 = vadd.s32 24, %v1545_v2  ;;  %s1501_s29 = smov 4   ;;  %s1502_s30 = smov 124  }
   0x8   :  { %1324 = vmatprep.subr.msk.bf16.mxu0 %vm1323_vm5, %v1943_v18  ;;  %v43_v42 = vadd.s32 80, %v1545_v2  ;;  %v45_v43 = vadd.s32 96, %v1545_v2  ;;  %v51_v44 = vshra.s32 %v35_v35, 4  ;;  %v38_v45 = vadd.s32 40, %v1545_v2  ;;  %s1503_s7 = smov 8   ;;  %s1504_s8 = smov 120  }
   0x9   :  { %1326 = vmatpush3.bf16.msk.msra.mxu0 %vm1323_vm5, %v1943_v18  ;;  %v53_v46 = vshra.s32 %v37_v36, 4  ;;  %v40_v47 = vadd.s32 56, %v1545_v2  ;;  %v50_v48 = vshra.s32 %v1561_v9, 4  ;;  %v55_v49 = vshra.s32 %v39_v37, 4  ;;  %v714_v29 = vld [vmem:[%s1936_s4] sm:$0xff] }
   0xa   :  { %1328 = vmatprep.subr.bf16.mxu0 %v1327_v13  ;;  %v42_v50 = vadd.s32 72, %v1545_v2  ;;  %v47_v51 = vadd.s32 112, %v1545_v2  ;;  %v57_v52 = vshra.s32 %v41_v39, 4  ;;  %v44_v53 = vadd.s32 88, %v1545_v2 }
   0xb   :  { %v46_v54 = vadd.s32 104, %v1545_v2  ;;  %v48_v55 = vadd.s32 120, %v1545_v2  ;;  %vm1645_vm7 = vcmp.eq.s32.totalorder %v49_v40, %v65_v38  ;;  %v52_v58 = vshra.s32 %v36_v41, 4 }
   0xc   :  { %1184 = vmatmul.mubr.msk.f32.vlgmr.msra.gmra.mrb[0].mxu0 %vm1940_vm0, %v1594_v19  ;;  %v59_v59 = vshra.s32 %v43_v42, 4  ;;  %v61_v60 = vshra.s32 %v45_v43, 4  ;;  %vm1651_vm8 = vcmp.eq.s32.totalorder %v51_v44, %v65_v38  ;;  %v54_v63 = vshra.s32 %v38_v45, 4 }
   0xd   :  { %1330 = vmatpush1.bf16.msra.mxu0 %v1329_v20  ;;  %293 = vmatprep.mubr.f32.mxu0 %v1945_v27  ;;  %vm1655_vm9 = vcmp.eq.s32.totalorder %v53_v46, %v65_v38  ;;  %v56_v1 = vshra.s32 %v40_v47, 4  ;;  %vm1659_vm10 = vcmp.eq.s32.totalorder %v50_v48, %v65_v38  ;;  %vm1663_vm11 = vcmp.eq.s32.totalorder %v55_v49, %v65_v38 }
   0xe   :  { %1332 = vmatprep.subr.bf16.mxu0 %v1331_v21  ;;  %v1960_v0 = vsel %vm1655_vm9, 4294967295, %v1959_v0  ;;  %v1963_v5 = vmov 0  ;;  %v58_v7 = vshra.s32 %v42_v50, 4  ;;  %v63_v8 = vshra.s32 %v47_v51, 4 }
   0xf   :  { %v1964_v5 = vsel %vm1663_vm11, 4294967295, %v1963_v5  ;;  %v1053_v10 = vsel %vm1645_vm7, 1.0, %v1945_v27  ;;  %v60_v13 = vshra.s32 %v44_v53, 4  ;;  %v62_v14 = vshra.s32 %v46_v54, 4 }
  0x10   :  { %v64_v15 = vshra.s32 %v48_v55, 4  ;;  %vm1670_vm12 = vcmp.eq.s32.totalorder %v52_v58, %v65_v38  ;;  %v1055_v17 = vsel %vm1651_vm8, 1.0, %v1945_v27  ;;  %v1057_v20 = vsel %vm1655_vm9, 1.0, %v1945_v27 }
  0x11   :  { %1334 = vmatpush1.bf16.msra.mxu0 %v1333_v26  ;;  %vm1680_vm13 = vcmp.eq.s32.totalorder %v57_v52, %v65_v38  ;;  %v1054_v22 = vsel %vm1659_vm10, 1.0, %v1945_v27  ;;  %vm1687_vm14 = vcmp.eq.s32.totalorder %v54_v63, %v65_v38  ;;  %vm1691_vm15 = vcmp.eq.s32.totalorder %v56_v1, %v65_v38 }
  0x12   :  { %1336 = vmatprep.subr.bf16.mxu0 %v1335_v28  ;;  %v1059_v25 = vsel %vm1663_vm11, 1.0, %v1945_v27  ;;  %vm1698_vm1 = vcmp.eq.s32.totalorder %v58_v7, %v65_v38  ;;  %vm1702_vm4 = vcmp.eq.s32.totalorder %v59_v59, %v65_v38  ;;  %vm1706_vm5 = vcmp.eq.s32.totalorder %v61_v60, %v65_v38 }
  0x13   :  { %v1979_v30 = vmov 0  ;;  %vm1721_vm11 = vcmp.eq.s32.totalorder %v62_v14, %v65_v38  ;;  %vm1725_vm9 = vcmp.eq.s32.totalorder %v64_v15, %v65_v38  ;;  %v1985_v35 = vmov 0 }
  0x14   :  { %1075 = vmatmul.mubr.msk.f32.vlgmr.msra.gmra.mrb[2].mxu0 %vm222_vm6, %v208_v31  ;;  %v1986_v35 = vsel %vm1725_vm9, 4294967295, %v1985_v35  ;;  %v1052_v37 = vsel %vm1572_vm3, 1.0, %v1945_v27  ;;  %v1058_v39 = vsel %vm1687_vm14, 1.0, %v1945_v27  ;;  %v1060_v40 = vsel %vm1691_vm15, 1.0, %v1945_v27 }
  0x15   :  { %1338 = vmatpush3.bf16.msra.mxu0 %v1335_v28  ;;  %299 = vmatprep.mubr.f32.mxu0 %v1945_v27  ;;  %v1062_v42 = vsel %vm1698_vm1, 1.0, %v1945_v27  ;;  %v1063_v12 = vsel %vm1702_vm4, 1.0, %v1945_v27  ;;  %v1065_v43 = vsel %vm1706_vm5, 1.0, %v1945_v27  ;;  %v1051_v45 = vsel %vm1567_vm2, 1.0, %v1945_v27 }
  0x16   :  { %1340 = vmatprep.subr.bf16.mxu0 %v1339_v32  ;;  %v1066_v47 = vsel %vm1721_vm11, 1.0, %v1945_v27  ;;  %v1068_v48 = vsel %vm1725_vm9, 1.0, %v1945_v27  ;;  %vm1988_vm2 = vcmask 130048   ;;  %vm1347_vm9 = vmpackc.low %vm1659_vm10, %vm1645_vm7 }
  0x17   :  { %vm1363_vm10 = vmpackc.low %vm1698_vm1, %vm1680_vm13 }
  0x18   :  { %1076 = vmatmul.mubr.msk.f32.gmra.mrb[4].mxu0 %vm222_vm6, %v209_v33 }
  0x19   :  { %1342 = vmatpush3.bf16.msra.mxu0 %v1339_v32  ;;  %1194 = vmatprep.mubr.msk.f32.mxu0 %vm222_vm6, %v208_v31  ;;  %v1056_v31 = vsel %vm1670_vm12, 1.0, %v1945_v27 }
  0x1c   :  { %1195 = vmatmul.mubr.msk.f32.vlgmr.msra.gmra.mrb[6].mxu0 %vm222_vm6, %v209_v33  ;;  %vm1710_vm6 = vcmp.eq.s32.totalorder %v63_v8, %v65_v38  ;;  %v715_v33 = vld [vmem:[%s1936_s4 + $0x8] sm:$0xff] }
  0x1d   :  { %1201 = vmatprep.mubr.msk.f32.mxu0 %vm1940_vm0, %v1947_v34  ;;  %v1980_v30 = vsel %vm1710_vm6, 4294967295, %v1979_v30  ;;  %vm1717_vm0 = vcmp.eq.s32.totalorder %v60_v13, %v65_v38  ;;  %v1061_v38 = vsel %vm1680_vm13, 1.0, %v1945_v27  ;;  %v1067_v44 = vsel %vm1710_vm6, 1.0, %v1945_v27  ;;  %vm1371_vm13 = vmpackc.low %vm1721_vm11, %vm1706_vm5 }
  0x1e   :  { %v1064_v46 = vsel %vm1717_vm0, 1.0, %v1945_v27  ;;  %vm1992_vm6 = vnez %v1960_v0  ;;  %v507_v0 = vand.u32 4, %v1547_v3  ;;  %vm115_vm5 = vcmp.eq.s32.totalorder %v1561_v9, %v1547_v3 }
  0x1f   :  { %vm1355_vm7 = vmpackc.low %vm1687_vm14, %vm1992_vm6  ;;  %vm114_vm6 = vcmp.eq.s32.totalorder %v1545_v2, %v1547_v3 }
  0x20   :  { %vm1367_vm14 = vmpackc.low %vm1717_vm0, %vm1702_vm4  ;;  %vm1996_vm0 = vnez %v1980_v30  ;;  %v1411_v30 = vpack.c.bf16 %v715_v33, %v714_v29  ;;  %vm1998_vm4 = vcmask 130048  }
  0xdf   :  { %v1643_v56 = vpop.f32.mrb[0].mxu0 }
  0xe0   :  { %v1649_v61 = vpop.f32.mrb[1].mxu0 }
  0xe7   :  { %v295_v36 = vpop.f32.mrb[2].mxu0 }
  0xe8   :  { %v297_v41 = vpop.f32.mrb[3].mxu0  ;;  %v608_v49 = vmul.f32 %v1053_v10, %v295_v36  ;;  %v610_v50 = vmul.f32 %v1055_v17, %v295_v36  ;;  %v612_v51 = vmul.f32 %v1057_v20, %v295_v36  ;;  %v614_v52 = vmul.f32 %v1059_v25, %v295_v36 }
  0xe9   :  { %v616_v54 = vmul.f32 %v1061_v38, %v295_v36  ;;  %v618_v11 = vmul.f32 %v1063_v12, %v295_v36  ;;  %v620_v55 = vmul.f32 %v1065_v43, %v295_v36  ;;  %v622_v58 = vmul.f32 %v1067_v44, %v295_v36 }
  0xeb   :  { %v301_v53 = vpop.f32.mrb[4].mxu0 }
  0xec   :  { %v303_v59 = vpop.f32.mrb[5].mxu0  ;;  %v609_v60 = vmul.f32 %v1054_v22, %v301_v53  ;;  %v611_v63 = vmul.f32 %v1056_v31, %v301_v53  ;;  %v613_v1 = vmul.f32 %v1058_v39, %v301_v53  ;;  %v615_v7 = vmul.f32 %v1060_v40, %v301_v53 }
  0xed   :  { %v617_v8 = vmul.f32 %v1062_v42, %v301_v53  ;;  %v619_v13 = vmul.f32 %v1064_v46, %v301_v53  ;;  %v621_v14 = vmul.f32 %v1066_v47, %v301_v53  ;;  %v623_v15 = vmul.f32 %v1068_v48, %v301_v53 }
  0xee   :  { %v1379_v18 = vpack.c.bf16 %v609_v60, %v608_v49  ;;  %v1383_v27 = vpack.c.bf16 %v611_v63, %v610_v50  ;;  %v1387_v10 = vpack.c.bf16 %v613_v1, %v612_v51  ;;  %v1391_v17 = vpack.c.bf16 %v615_v7, %v614_v52 }
  0xef   :  { %v1196_v20 = vpop.f32.mrb[6].mxu0  ;;  %v1395_v25 = vpack.c.bf16 %v617_v8, %v616_v54  ;;  %v1399_v34 = vpack.c.bf16 %v619_v13, %v618_v11  ;;  %v1403_v38 = vpack.c.bf16 %v621_v14, %v620_v55  ;;  %v1407_v12 = vpack.c.bf16 %v623_v15, %v622_v58 }
  0xf0   :  { %v382_v43 = vmul.f32 %v1196_v20, %v1052_v37  ;;  %v372_v36 = vpop.f32.mrb[7].mxu0  ;;  %v1987_v31 = vmov 1.0   ;;  %v493_v54 = vand.u32 2, %v1547_v3  ;;  %v1991_v55 = vmov 1.0|1.0  }
  0xf1   :  { %v381_v44 = vmul.f32 %v1051_v45, %v372_v36  ;;  %1348 = vmatprep.subr.msk.bf16.mxu1 %vm1347_vm9, %v1991_v55 }
  0xf2   :  { %1350 = vmatpush3.bf16.msk.msra.mxu1 %vm1347_vm9, %v1991_v55 }
  0xf3   :  { %v1343_v22 = vpack.c.bf16 %v382_v43, %v381_v44 }
  0xf5   :  { %1344 = vmatprep.subr.bf16.mxu0 %v1343_v22 }
  0xf6   :  { %1346 = vmatpush3.bf16.msra.mxu0 %v1343_v22  ;;  %v716_v22 = vld [vmem:[%s1936_s4 + $0x10] sm:$0xff] }
  0xf7   :  { %1380 = vmatprep.subr.bf16.mxu0 %v1379_v18 }
  0xf9   :  { %1202 = vmatmul.mubr.msk.f32.vlgmr.msra.gmra.mrb[8].mxu0 %vm1988_vm2, %v1987_v31 }
  0xfa   :  { %1382 = vmatpush3.bf16.msra.mxu0 %v1379_v18 }
  0xfb   :  { %1384 = vmatprep.subr.bf16.mxu0 %v1383_v27 }
  0xfe   :  { %1386 = vmatpush3.bf16.msra.mxu0 %v1383_v27 }
  0xff   :  { %1388 = vmatprep.subr.bf16.mxu0 %v1387_v10 }
 0x102   :  { %1390 = vmatpush3.bf16.msra.mxu0 %v1387_v10 }
 0x103   :  { %1392 = vmatprep.subr.bf16.mxu0 %v1391_v17 }
 0x106   :  { %1394 = vmatpush3.bf16.msra.mxu0 %v1391_v17 }
 0x107   :  { %1396 = vmatprep.subr.bf16.mxu0 %v1395_v25 }
 0x10a   :  { %1398 = vmatpush3.bf16.msra.mxu0 %v1395_v25 }
 0x10b   :  { %1400 = vmatprep.subr.bf16.mxu0 %v1399_v34 }
 0x10e   :  { %1402 = vmatpush3.bf16.msra.mxu0 %v1399_v34  ;;  %v479_v34 = vand.u32 1, %v1547_v3 }
 0x10f   :  { %1404 = vmatprep.subr.bf16.mxu0 %v1403_v38 }
 0x112   :  { %1406 = vmatpush3.bf16.msra.mxu0 %v1403_v38 }
 0x113   :  { %1408 = vmatprep.subr.bf16.mxu0 %v1407_v12 }
 0x116   :  { %1410 = vmatpush3.bf16.msra.mxu0 %v1407_v12 }
 0x1cc   :  { %v1203_v37 = vpop.f32.mrb[8].mxu0 }
 0x1cd   :  { %v462_v39 = vadd.f32 %v1203_v37, %v303_v59  ;;  %v452_v40 = vpop.f32.mrb[9].mxu0  ;;  %v717_v37 = vld [vmem:[%s1936_s4 + $0x18] sm:$0xff] }
 0x1ce   :  { %v461_v42 = vadd.f32 %v452_v40, %v297_v41 }
 0x1cf   :  { %vm464_vm3 = vcmp.gt.f32.partialorder %v462_v39, 0.0  ;;  %v466_v18 = vmul.f32 0.2, %v462_v39 }
 0x1d0   :  { %vm463_vm2 = vcmp.gt.f32.partialorder %v461_v42, 0.0  ;;  %v465_v27 = vmul.f32 0.2, %v461_v42 }
 0x1d1   :  { %v468_v45 = vsel %vm464_vm3, %v462_v39, %v466_v18  ;;  %vm480_vm3 = vcmp.eq.s32.totalorder %v479_v34, 0  ;;  %v1415_v39 = vpack.c.bf16 %v717_v37, %v716_v22  ;;  %v719_v18 = vld [vmem:[%s1936_s4 + $0x28] sm:$0xff] }
 0x1d2   :  { %v1768_v46 = vadd.f32 %v1643_v56, %v468_v45  ;;  %v467_v47 = vsel %vm463_vm2, %v461_v42, %v465_v27  ;;  %vm1781_vm2 = vcmp.eq.s32.totalorder %v493_v54, 0  ;;  %v718_v42 = vld [vmem:[%s1936_s4 + $0x20] sm:$0xff]  ;;  %v720_v45 = vld [vmem:[%s1936_s4 + $0x30] sm:$0xff]  ;;  %v723_v34 = vld [vmem:[%s1936_s4 + $0x48] sm:$0xff] }
 0x1d3   :  { %v1771_v48 = vadd.f32 %v467_v47, %v1649_v61  ;;  %v1419_v27 = vpack.c.bf16 %v719_v18, %v718_v42  ;;  %v729_v54 = vld [vmem:[%s1936_s4 + $0x78] sm:$0xff] }
 0x1d4   :  { %473 = vrot.lane.b32.xlu1 %v1768_v46, %s1497_s0 }
 0x1d5   :  { %471 = vrot.lane.b32.xlu0 %v1771_v48, %s1497_s0 }
 0x1d8   :  { %477 = vrot.lane.b32.xlu1 %v1768_v46, %s1498_s2 }
 0x1d9   :  { %475 = vrot.lane.b32.xlu0 %v1771_v48, %s1498_s2 }
 0x246   :  { %v474_v41 = vpop.permute.xlu1 %473 }
 0x247   :  { %v472_v49 = vpop.permute.xlu0 %471 }
 0x24a   :  { %v478_v56 = vpop.permute.xlu1 %477 }
 0x24b   :  { %v476_v50 = vpop.permute.xlu0 %475  ;;  %v482_v52 = vsel %vm480_vm3, %v474_v41, %v478_v56  ;;  %v725_v56 = vld [vmem:[%s1936_s4 + $0x58] sm:$0xff] }
 0x24c   :  { %v481_v51 = vsel %vm480_vm3, %v472_v49, %v476_v50  ;;  %v484_v53 = vmax.f32 %v1768_v46, %v482_v52  ;;  %vm1351_vm3 = vmpackc.low %vm1670_vm12, %vm1651_vm8  ;;  %vm1993_vm8 = vnez %v1964_v5  ;;  %vm1818_vm12 = vcmp.eq.s32.totalorder %v507_v0, 0  ;;  %v724_v49 = vld [vmem:[%s1936_s4 + $0x50] sm:$0xff] }
 0x24d   :  { %v483_v61 = vmax.f32 %v1771_v48, %v481_v51  ;;  %1352 = vmatprep.subr.msk.bf16.mxu1 %vm1351_vm3, %v1991_v55  ;;  %vm1359_vm9 = vmpackc.low %vm1691_vm15, %vm1993_vm8  ;;  %vm1997_vm15 = vnez %v1986_v35  ;;  %v521_v35 = vand.u32 8, %v1547_v3  ;;  %v1431_v50 = vpack.c.bf16 %v725_v56, %v724_v49  ;;  %v726_v51 = vld [vmem:[%s1936_s4 + $0x60] sm:$0xff] }
 0x24e   :  { %1354 = vmatpush3.bf16.msk.msra.mxu1 %vm1351_vm3, %v1991_v55  ;;  %vm1375_vm1 = vmpackc.low %vm1997_vm15, %vm1996_vm0  ;;  %v1100_v56 = vld [vmem:[%s1938_s5] ss:$0 sm:$0xff]  ;;  %vm1020_vm0 = vcmask 31744  }
 0x24f   :  { %489 = vrot.lane.b32.xlu1 %v483_v61, %s1499_s28  ;;  %485 = vrot.lane.b32.xlu0 %v483_v61, %s1500_s1  ;;  %vm522_vm11 = vcmp.eq.s32.totalorder %v521_v35, 0 }
 0x250   :  { %1356 = vmatprep.subr.msk.bf16.mxu1 %vm1355_vm7, %v1991_v55 }
 0x252   :  { %1358 = vmatpush3.bf16.msk.msra.mxu1 %vm1355_vm7, %v1991_v55 }
 0x253   :  { %491 = vrot.lane.b32.xlu1 %v484_v53, %s1499_s28  ;;  %487 = vrot.lane.b32.xlu0 %v484_v53, %s1500_s1 }
 0x254   :  { %1360 = vmatprep.subr.msk.bf16.mxu1 %vm1359_vm9, %v1991_v55 }
 0x256   :  { %1362 = vmatpush3.bf16.msk.msra.mxu1 %vm1359_vm9, %v1991_v55 }
 0x257   :  { %1364 = vmatprep.subr.msk.bf16.mxu1 %vm1363_vm10, %v1991_v55 }
 0x25a   :  { %1366 = vmatpush3.bf16.msk.msra.mxu1 %vm1363_vm10, %v1991_v55 }
 0x25b   :  { %1368 = vmatprep.subr.msk.bf16.mxu1 %vm1367_vm14, %v1991_v55 }
 0x25e   :  { %1370 = vmatpush3.bf16.msk.msra.mxu1 %vm1367_vm14, %v1991_v55 }
 0x25f   :  { %1372 = vmatprep.subr.msk.bf16.mxu1 %vm1371_vm13, %v1991_v55 }
 0x262   :  { %1374 = vmatpush3.bf16.msk.msra.mxu1 %vm1371_vm13, %v1991_v55 }
 0x263   :  { %1376 = vmatprep.subr.msk.bf16.mxu1 %vm1375_vm1, %v1991_v55 }
 0x266   :  { %1378 = vmatpush3.bf16.msk.msra.mxu1 %vm1375_vm1, %v1991_v55  ;;  %v1505_v55 = vmov 4  }
 0x267   :  { %1412 = vmatprep.subr.bf16.mxu1 %v1411_v30  ;;  %1466 = vset.pattern.permute.xlu1 %v1505_v55 }
 0x268   :  { %1465 = vset.pattern.permute.xlu0 %v1505_v55 }
 0x2c1   :  { %v490_v58 = vpop.permute.xlu1 %489  ;;  %v486_v59 = vpop.permute.xlu0 %485 }
 0x2c2   :  { %v495_v60 = vsel %vm1781_vm2, %v486_v59, %v490_v58 }
 0x2c3   :  { %v497_v57 = vmax.f32 %v483_v61, %v495_v60  ;;  %v727_v61 = vld [vmem:[%s1936_s4 + $0x68] sm:$0xff] }
 0x2c4   :  { %v1435_v52 = vpack.c.bf16 %v727_v61, %v726_v51 }
 0x2c5   :  { %v492_v4 = vpop.permute.xlu1 %491  ;;  %503 = vrot.lane.b32.xlu1 %v497_v57, %s1501_s29  ;;  %499 = vrot.lane.b32.xlu0 %v497_v57, %s1502_s30  ;;  %v488_v62 = vpop.permute.xlu0 %487 }
 0x2c6   :  { %v496_v16 = vsel %vm1781_vm2, %v488_v62, %v492_v4  ;;  %v1097_v62 = vld [vmem:[%s1937_s3] ss:$0 sm:$0xff]  ;;  %vm2000_vm2 = vmmov %vm1998_vm4 }
 0x2c7   :  { %v498_v63 = vmax.f32 %v484_v53, %v496_v16  ;;  %v728_v53 = vld [vmem:[%s1936_s4 + $0x70] sm:$0xff]  ;;  %vm2001_vm8 = vmmov %vm2000_vm2 }
 0x2c8   :  { %v1439_v11 = vpack.c.bf16 %v729_v54, %v728_v53  ;;  %vm2002_vm9 = vmmov %vm2000_vm2 }
 0x2c9   :  { %505 = vrot.lane.b32.xlu1 %v498_v63, %s1501_s29  ;;  %501 = vrot.lane.b32.xlu0 %v498_v63, %s1502_s30  ;;  %vm2003_vm10 = vmmov %vm2000_vm2 }
 0x2ca   :  { %vm2005_vm14 = vmmov %vm2000_vm2 }
 0x2cb   :  { %vm2006_vm13 = vmmov %vm2000_vm2 }
 0x337   :  { %v504_v5 = vpop.permute.xlu1 %503  ;;  %v500_v24 = vpop.permute.xlu0 %499 }
 0x338   :  { %v509_v1 = vsel %vm1818_vm12, %v500_v24, %v504_v5 }
 0x339   :  { %v511_v21 = vmax.f32 %v497_v57, %v509_v1 }
 0x33b   :  { %v506_v26 = vpop.permute.xlu1 %505  ;;  %517 = vrot.lane.b32.xlu1 %v511_v21, %s1503_s7  ;;  %513 = vrot.lane.b32.xlu0 %v511_v21, %s1504_s8  ;;  %v502_v7 = vpop.permute.xlu0 %501 }
 0x33c   :  { %v510_v28 = vsel %vm1818_vm12, %v502_v7, %v506_v26  ;;  %vm2004_vm12 = vmmov %vm2000_vm2 }
 0x33d   :  { %v512_v32 = vmax.f32 %v498_v63, %v510_v28  ;;  %v1506_v28 = vmov 5  }
 0x33f   :  { %519 = vrot.lane.b32.xlu1 %v512_v32, %s1503_s7  ;;  %515 = vrot.lane.b32.xlu0 %v512_v32, %s1504_s8 }
 0x3ad   :  { %v518_v8 = vpop.permute.xlu1 %517  ;;  %v514_v13 = vpop.permute.xlu0 %513 }
 0x3ae   :  { %v523_v14 = vsel %vm522_vm11, %v514_v13, %v518_v8 }
 0x3af   :  { %v525_v15 = vmax.f32 %v511_v21, %v523_v14 }
 0x3b1   :  { %v527_v10 = vsub.f32 %v1771_v48, %v525_v15  ;;  %v520_v17 = vpop.permute.xlu1 %519  ;;  %v516_v20 = vpop.permute.xlu0 %515  ;;  %v722_v48 = vld [vmem:[%s1936_s4 + $0x40] sm:$0xff] }
 0x3b2   :  { %v524_v25 = vsel %vm522_vm11, %v516_v20, %v520_v17  ;;  %v1427_v41 = vpack.c.bf16 %v723_v34, %v722_v48 }
 0x3b3   :  { %v529_v38 = vmul.f32 1.442695, %v527_v10  ;;  %v526_v12 = vmax.f32 %v512_v32, %v524_v25  ;;  %v1999_v32 = vmov 0.0  }
 0x3b4   :  { %v1070_v29 = vsel %vm115_vm5, 1.0, %v1999_v32  ;;  %v1069_v33 = vsel %vm114_vm6, 1.0, %v1999_v32 }
 0x3b5   :  { %1469 = vpow2.f32 %v529_v38  ;;  %v528_v43 = vsub.f32 %v1768_v46, %v526_v12  ;;  %v721_v46 = vld [vmem:[%s1936_s4 + $0x38] sm:$0xff] }
 0x3b6   :  { %v1423_v47 = vpack.c.bf16 %v721_v46, %v720_v45 }
 0x3b7   :  { %v531_v36 = vmul.f32 1.442695, %v528_v43 }
 0x3b9   :  { %1471 = vpow2.f32 %v531_v36 }
 0x3bf   :  { %v1470_v44 = vpop.eup %1469 }
 0x3c0   :  { %1236 = vmatprep.mubr.f32.mxu1 %v1470_v44  ;;  %1271 = vmatprep.mubr.f32.mxu0 %v1470_v44 }
 0x3c3   :  { %v1472_v40 = vpop.eup %1471 }
 0x3c4   :  { %1237 = vmatmul.mubr.f32.vlgmr.msra.gmra.mrb[0].mxu1 %v1472_v40  ;;  %1272 = vmatmul.mubr.f32.vlgmr.msra.gmra.mrb[10].mxu0 %v1472_v40 }
 0x3c5   :  { %1414 = vmatpush3.bf16.msra.mxu1 %v1411_v30  ;;  %1313 = vmatprep.mubr.msk.f32.mxu0 %vm1998_vm4, %v1987_v31 }
 0x3c6   :  { %1416 = vmatprep.subr.bf16.mxu1 %v1415_v39 }
 0x3c9   :  { %1418 = vmatpush3.bf16.msra.mxu1 %v1415_v39 }
 0x3ca   :  { %1420 = vmatprep.subr.bf16.mxu1 %v1419_v27 }
 0x3cd   :  { %1422 = vmatpush3.bf16.msra.mxu1 %v1419_v27 }
 0x3ce   :  { %1424 = vmatprep.subr.bf16.mxu1 %v1423_v47 }
 0x3d1   :  { %1426 = vmatpush3.bf16.msra.mxu1 %v1423_v47 }
 0x3d2   :  { %1428 = vmatprep.subr.bf16.mxu1 %v1427_v41 }
 0x3d5   :  { %1430 = vmatpush3.bf16.msra.mxu1 %v1427_v41 }
 0x3d6   :  { %1432 = vmatprep.subr.bf16.mxu1 %v1431_v50 }
 0x3d9   :  { %1434 = vmatpush3.bf16.msra.mxu1 %v1431_v50 }
 0x3da   :  { %1436 = vmatprep.subr.bf16.mxu1 %v1435_v52 }
 0x3dd   :  { %1438 = vmatpush3.bf16.msra.mxu1 %v1435_v52 }
 0x3de   :  { %1440 = vmatprep.subr.bf16.mxu1 %v1439_v11 }
 0x3e1   :  { %1442 = vmatpush3.bf16.msra.mxu1 %v1439_v11 }
 0x497   :  { %v1238_v58 = vpop.f32.mrb[0].mxu1  ;;  %v1273_v59 = vpop.f32.mrb[10].mxu0 }
 0x498   :  { %1473 = vrcp.f32 %v1238_v58  ;;  %v599_v60 = vpop.f32.mrb[1].mxu1  ;;  %v690_v57 = vpop.f32.mrb[11].mxu0 }
 0x499   :  { %1475 = vrcp.f32 %v599_v60 }
 0x4a2   :  { %v1474_v4 = vpop.eup %1473 }
 0x4a3   :  { %v1476_v16 = vpop.eup %1475  ;;  %v702_v63 = vmul.f32 %v1474_v4, %v1273_v59 }
 0x4a4   :  { %v701_v0 = vmul.f32 %v1476_v16, %v690_v57 }
 0x4a5   :  { %v711_v23 = vadd.f32 %v1097_v62, %v702_v63 }
 0x4a6   :  { %v710_v5 = vadd.f32 %v1097_v62, %v701_v0 }
 0x4a7   :  { %v713_v1 = vmax.f32 %v711_v23, 0.0 }
 0x4a8   :  { %v712_v24 = vmax.f32 %v710_v5, 0.0 }
 0x4aa   :  { %1306 = vmatprep.mubr.f32.mxu1 %v712_v24 }
 0x4ab   :  { %1307 = vmatmul.mubr.f32.vlgmr.msra.gmra.mrb[2].mxu1 %v713_v1 }
 0x57e   :  { %v1308_v21 = vpop.f32.mrb[2].mxu1 }
 0x57f   :  { %812 = vperm.xlu1 %1466, %v1308_v21   ;;  %v796_v26 = vpop.f32.mrb[3].mxu1 }
 0x580   :  { %v1447_v7 = vpack.c.bf16 %v1308_v21, %v796_v26  ;;  %807 = vperm.xlu0 %1465, %v796_v26  }
 0x583   :  { %1467 = vset.pattern.permute.xlu1 %v1506_v28 }
 0x584   :  { %893 = vperm.xlu1 %1467, %v796_v26   ;;  %1468 = vset.pattern.permute.xlu0 %v1506_v28 }
 0x585   :  { %897 = vperm.xlu0 %1468, %v1308_v21  }
 0x5fe   :  { %v813_v30 = vpop.permute.xlu1 %812 }
 0x5ff   :  { %v816_v35 = vmul.f32 %v1070_v29, %v813_v30  ;;  %v808_v8 = vpop.permute.xlu0 %807 }
 0x600   :  { %v815_v13 = vmul.f32 %v1069_v33, %v808_v8 }
 0x602   :  { %v1443_v14 = vpack.c.bf16 %v816_v35, %v815_v13 }
 0x603   :  { %v894_v10 = vpop.permute.xlu1 %893 }
 0x604   :  { %1444 = vmatprep.subr.bf16.mxu0 %v1443_v14  ;;  %v898_v9 = vpop.permute.xlu0 %897 }
 0x605   :  { %1446 = vmatpush3.bf16.msra.mxu0 %v1443_v14 }
 0x606   :  { %1448 = vmatprep.subr.bf16.mxu0 %v1447_v7 }
 0x608   :  { %1314 = vmatmul.mubr.msk.f32.vlgmr.msra.gmra.mrb[12].mxu0 %vm2000_vm2, %v1987_v31 }
 0x609   :  { %1450 = vmatpush3.bf16.msra.mxu0 %v1447_v7 }
 0x6db   :  { %v1315_v15 = vpop.f32.mrb[12].mxu0 }
 0x6dc   :  { %v901_v2 = vadd.f32 %v1315_v15, %v898_v9  ;;  %v883_v3 = vpop.f32.mrb[13].mxu0 }
 0x6dd   :  { %v900_v17 = vadd.f32 %v894_v10, %v883_v3 }
 0x6de   :  { %vm903_vm3 = vcmp.gt.f32.partialorder %v901_v2, 0.0  ;;  %v905_v20 = vmul.f32 0.2, %v901_v2 }
 0x6df   :  { %vm902_vm7 = vcmp.gt.f32.partialorder %v900_v17, 0.0  ;;  %v904_v25 = vmul.f32 0.2, %v900_v17 }
 0x6e0   :  { %v907_v38 = vsel %vm903_vm3, %v901_v2, %v905_v20 }
 0x6e1   :  { %v909_v12 = vadd.f32 %v907_v38, %v1594_v19  ;;  %v906_v43 = vsel %vm902_vm7, %v900_v17, %v904_v25 }
 0x6e2   :  { %v908_v36 = vadd.f32 %v906_v43, %v1552_v6 }
 0x6e3   :  { %v913_v44 = vsel %vm2001_vm8, %v909_v12, -inf }
 0x6e4   :  { %914 = vmax.xlane.f32.xlu0 %v913_v44  ;;  %v910_v31 = vsel %vm2002_vm9, %v908_v36, -inf }
 0x6e5   :  { %911 = vmax.xlane.f32.xlu1 %v910_v31 }
 0x771   :  { %v915_v22 = vpop.xlane.xlu0 %914 }
 0x772   :  { %v917_v37 = vsub.f32 %v909_v12, %v915_v22  ;;  %v912_v39 = vpop.xlane.xlu1 %911 }
 0x773   :  { %v916_v40 = vsub.f32 %v908_v36, %v912_v39 }
 0x774   :  { %v920_v42 = vmul.f32 1.442695, %v917_v37 }
 0x775   :  { %v918_v18 = vmul.f32 1.442695, %v916_v40 }
 0x776   :  { %1477 = vpow2.f32 %v920_v42 }
 0x777   :  { %1479 = vpow2.f32 %v918_v18 }
 0x780   :  { %v1478_v27 = vpop.eup %1477 }
 0x781   :  { %v1480_v45 = vpop.eup %1479  ;;  %v925_v19 = vsel %vm2003_vm10, %v1478_v27, 0.0 }
 0x782   :  { %926 = vadd.xlane.f32.xlu0 %v925_v19  ;;  %v922_v6 = vsel %vm2004_vm12, %v1480_v45, 0.0 }
 0x783   :  { %923 = vadd.xlane.f32.xlu1 %v922_v6 }
 0x80f   :  { %v927_v46 = vpop.xlane.xlu0 %926 }
 0x810   :  { %1481 = vrcp.f32 %v927_v46  ;;  %v924_v47 = vpop.xlane.xlu1 %923 }
 0x811   :  { %1483 = vrcp.f32 %v924_v47 }
 0x81a   :  { %v1482_v48 = vpop.eup %1481 }
 0x81b   :  { %v1484_v34 = vpop.eup %1483  ;;  %v931_v49 = vmul.f32 %v1482_v48, %v1478_v27 }
 0x81c   :  { %v930_v41 = vmul.f32 %v1484_v34, %v1480_v45 }
 0x81e   :  { %1320 = vmatprep.mubr.msk.f32.mxu0 %vm2005_vm14, %v930_v41 }
 0x81f   :  { %1321 = vmatmul.mubr.msk.f32.vlgmr.msra.gmra.mrb[14].mxu0 %vm2006_vm13, %v931_v49 }
 0x8f2   :  { %v1322_v50 = vpop.f32.mrb[14].mxu0 }
 0x8f3   :  { %v1017_v51 = vadd.f32 %v1322_v50, %v1100_v56  ;;  %v1011_v61 = vpop.f32.mrb[15].mxu0 }
 0x8f4   :  { %v1012_v52 = vadd.f32 %v1100_v56, %v1011_v61 }
 0x8f5   :  { %v1024_v53 = vsel %vm1020_vm0, %v1017_v51, -inf }
 0x8f6   :  { %1025 = vmax.xlane.f32.xlu0 %v1024_v53  ;;  %v1021_v54 = vsel %vm1020_vm0, %v1012_v52, -inf }
 0x8f7   :  { %1022 = vmax.xlane.f32.xlu1 %v1021_v54 }
 0x983   :  { %v1026_v11 = vpop.xlane.xlu0 %1025 }
 0x984   :  { %v1028_v55 = vsub.f32 %v1017_v51, %v1026_v11  ;;  %v1023_v58 = vpop.xlane.xlu1 %1022 }
 0x985   :  { %v1027_v59 = vsub.f32 %v1012_v52, %v1023_v58 }
 0x986   :  { %v1031_v60 = vmul.f32 1.442695, %v1028_v55 }
 0x987   :  { %v1029_v57 = vmul.f32 1.442695, %v1027_v59 }
 0x988   :  { %1485 = vpow2.f32 %v1031_v60 }
 0x989   :  { %1487 = vpow2.f32 %v1029_v57 }
 0x992   :  { %v1486_v4 = vpop.eup %1485 }
 0x993   :  { %v1488_v62 = vpop.eup %1487  ;;  %v1036_v16 = vsel %vm1020_vm0, %v1486_v4, 0.0 }
 0x994   :  { %1037 = vadd.xlane.f32.xlu0 %v1036_v16  ;;  %v1033_v63 = vsel %vm1020_vm0, %v1488_v62, 0.0 }
 0x995   :  { %1034 = vadd.xlane.f32.xlu1 %v1033_v63 }
 0xa21   :  { %v1038_v0 = vpop.xlane.xlu0 %1037 }
 0xa22   :  { %1489 = vlog2.f32 %v1038_v0  ;;  %v1035_v23 = vpop.xlane.xlu1 %1034 }
 0xa23   :  { %1491 = vlog2.f32 %v1035_v23 }
 0xa2c   :  { %v1490_v5 = vpop.eup %1489 }
 0xa2d   :  { %v1492_v24 = vpop.eup %1491  ;;  %v1042_v1 = vmul.f32 0.6931472, %v1490_v5 }
 0xa2e   :  { %v1040_v21 = vmul.f32 0.6931472, %v1492_v24 }
 0xa2f   :  { %v1044_v26 = vsub.f32 %v1028_v55, %v1042_v1 }
 0xa30   :  { %v1043_v7 = vsub.f32 %v1027_v59, %v1040_v21 }
 0xa31   :  { %1046 = vst.msk [vmem:[%s1939_s6 + $0x8] sm:$0xff] %vm1020_vm0, %v1044_v26 }
 0xa32   :  { %1045 = vst.msk [vmem:[%s1939_s6] sm:$0xff] %vm1020_vm0, %v1043_v7 }

</bundles_post_ra>
